<compile_context>
chip_gen: v7x
topology: tpu7x:2x2x1
jax: 0.10.0
libtpu: 0.0.40
codegen_flags: <defaults>
</compile_context>

<pallas_src>
import math

import jax
import jax.numpy as jnp
from jax.experimental import pallas as pl
from jax.experimental.pallas import tpu as pltpu


def _round_up(x, m):
    return (x + m - 1) // m * m


def _pad2(a, rows, cols):
    if rows == 0 and cols == 0:
        return a
    return jnp.pad(a, ((0, rows), (0, cols)))


def mlp_kernel(x_ref, w1_ref, b1_ref, w2_ref, b2_ref, o_ref, acc_ref):
    """Grid point (row_tile i, hidden_chunk h):
       fc1-chunk -> bias -> GELU -> fc2-chunk partial-accumulate into f32 acc."""
    h_idx = pl.program_id(1)

    @pl.when(h_idx == 0)
    def _init():
        acc_ref[...] = jnp.zeros_like(acc_ref)

    # fc1 chunk: cast x to the matmul dtype at the MXU boundary (the VPU cast
    # hides under the matmul); f32 accumulation on the MXU.
    xb = x_ref[...].astype(w1_ref.dtype)
    h = jnp.dot(xb, w1_ref[...], preferred_element_type=jnp.float32)
    h = h + b1_ref[...]                       # f32 bias add (VPU)
    # tanh GELU -> EUP slot.
    # TODO(synk): PyTorch F.gelu is the exact erf GELU; the tanh approximation
    # deviates by <~1e-3, well below the bf16 matmul quantization already used.
    h = jax.nn.gelu(h, approximate=True)
    # dropout (eval mode) == identity

    # fc2 partial product, accumulated in f32 across hidden chunks.
    acc_ref[...] += jnp.dot(h.astype(w2_ref.dtype), w2_ref[...],
                            preferred_element_type=jnp.float32)

    @pl.when(h_idx == pl.num_programs(1) - 1)
    def _finalize():
        o_ref[...] = (acc_ref[...] + b2_ref[...]).astype(o_ref.dtype)


def mlp_forward(x, w1, b1, w2, b2, *, tm=None, matmul_dtype=jnp.bfloat16):
    """x: (B, S, C).  w1: (C, H), b1: (H,), w2: (H, C), b2: (C,)."""
    B, S, C = x.shape
    H = w1.shape[1]
    assert w1.shape == (C, H) and w2.shape == (H, C)
    M = B * S
    out_dtype = x.dtype

    # ---- hardware-aware budgets --------------------------------------------
    try:
        vmem_cap = int(pltpu.get_tpu_info().vmem_capacity_bytes)
    except Exception:
        vmem_cap = 64 << 20            # conservative fallback (v7x per-core VMEM)
    vmem_budget = vmem_cap - (12 << 20)   # headroom for compiler temps

    if tm is None:
        # Bigger row tiles on 128 MiB-VMEM parts (v5e/v6e); 256 on v7x (64 MiB).
        tm = 512 if vmem_cap >= (96 << 20) else 256

    # ---- lane/MXU-friendly feature dims (zero padding is exact) -------------
    C_pad = _round_up(C, 128)
    H_pad = _round_up(H, 128)

    # ---- row tile ------------------------------------------------------------
    tm_eff = min(tm, _round_up(M, 8))
    n_rows = pl.cdiv(M, tm_eff)
    if n_rows < 2 and M > 8:
        # v7x has 2 TensorCores; give the "parallel" axis >= 2 steps so both
        # cores get work.  Costs nothing on single-core chips.
        tm_eff = _round_up(pl.cdiv(M, 2), 8)
        n_rows = pl.cdiv(M, tm_eff)

    bytes_x = jnp.dtype(x.dtype).itemsize
    bytes_o = jnp.dtype(out_dtype).itemsize
    bytes_w = jnp.dtype(matmul_dtype).itemsize

    # Fixed VMEM (independent of hidden tile): double-buffered x/out row tiles,
    # biases, f32 accumulator scratch.
    fixed = (2 * tm_eff * C_pad * bytes_x
             + 2 * tm_eff * C_pad * bytes_o
             + 2 * (H_pad + C_pad) * 4
             + tm_eff * C_pad * 4)

    # Hidden-tile cost: W1 + W2 chunks (counted double-buffered = worst case,
    # even though the resident path requests single buffering) plus the live
    # f32 (tm, th) intermediate.
    def hidden_cost(th_, bufs):
        return bufs * 2 * C_pad * th_ * bytes_w + tm_eff * th_ * 4

    if fixed + hidden_cost(H_pad, 2) <= vmem_budget:
        th = H_pad
        resident = True
    else:
        per = hidden_cost(128, 2)
        th_max = max(128, ((vmem_budget - fixed) // per) * 128)
        th_max = min(th_max, H_pad)
        th = 128
        for cand in range(th_max, 127, -128):   # largest tile dividing H_pad
            if H_pad % cand == 0:
                th = cand
                break
        resident = False
    n_h = H_pad // th

    # ---- operand prep --------------------------------------------------------
    # x keeps its original dtype (cast happens in-kernel); only the feature dim
    # is padded, and only when C is not lane-aligned (real TransUNet dims are).
    x2 = _pad2(x.reshape(M, C), 0, C_pad - C)
    w1m = _pad2(w1, C_pad - C, H_pad - H).astype(matmul_dtype)
    b1m = _pad2(b1.reshape(1, H).astype(jnp.float32), 0, H_pad - H)
    w2m = _pad2(w2, H_pad - H, C_pad - C).astype(matmul_dtype)
    b2m = _pad2(b2.reshape(1, C).astype(jnp.float32), 0, C_pad - C)

    # ---- specs ---------------------------------------------------------------
    def weight_spec(shape, index_map):
        # Resident (single H chunk): constant index_map -> single-buffer to
        # halve the weight VMEM footprint.  Fall back to the default if this
        # JAX version does not support pipeline_mode.
        if resident and hasattr(pl, "Buffered"):
            try:
                return pl.BlockSpec(shape, index_map,
                                    pipeline_mode=pl.Buffered(buffer_count=1))
            except Exception:
                pass
        return pl.BlockSpec(shape, index_map)

    in_specs = [
        pl.BlockSpec((tm_eff, C_pad), lambda i, h: (i, 0)),   # x row tile
        weight_spec((C_pad, th), lambda i, h: (0, h)),        # W1 chunk
        weight_spec((1, th), lambda i, h: (0, h)),            # b1 chunk
        weight_spec((th, C_pad), lambda i, h: (h, 0)),        # W2 chunk
        weight_spec((1, C_pad), lambda i, h: (0, 0)),         # b2
    ]
    out_specs = pl.BlockSpec((tm_eff, C_pad), lambda i, h: (i, 0))

    needed = fixed + hidden_cost(th, 2)
    vmem_limit = int(min(needed + (8 << 20), vmem_cap - (4 << 20)))

    flops = 4 * M * C_pad * H_pad            # two (M,C)x(C,H)-class matmuls
    bytes_accessed = (M * C_pad * (bytes_x + bytes_o)
                      + 2 * C_pad * H_pad * bytes_w
                      + (H_pad + C_pad) * 4)

    out = pl.pallas_call(
        mlp_kernel,
        out_shape=jax.ShapeDtypeStruct((M, C_pad), out_dtype),
        grid_spec=pltpu.PrefetchScalarGridSpec(
            num_scalar_prefetch=0,
            grid=(n_rows, n_h),
            in_specs=in_specs,
            out_specs=out_specs,
            scratch_shapes=[pltpu.VMEM((tm_eff, C_pad), jnp.float32)],
        ),
        compiler_params=pltpu.CompilerParams(
            dimension_semantics=("parallel", "arbitrary"),
            vmem_limit_bytes=vmem_limit,
        ),
        cost_estimate=pl.CostEstimate(
            flops=flops,
            transcendentals=M * H_pad,       # GELU
            bytes_accessed=bytes_accessed,
        ),
    )(x2, w1m, b1m, w2m, b2m)

    out = out[:, :C] if C_pad != C else out
    return out.reshape(B, S, C)


def init_params(key, input_dim, hidden_dim, dtype=jnp.float32):
    """Deterministic init mimicking nn.Linear default (uniform(-1/sqrt(fan_in), ...))."""
    k1, k2, k3, k4 = jax.random.split(key, 4)
    bound1 = 1.0 / math.sqrt(input_dim)
    bound2 = 1.0 / math.sqrt(hidden_dim)
    # stored as (in, out) == PyTorch weight.T
    w1 = jax.random.uniform(k1, (input_dim, hidden_dim), dtype, -bound1, bound1)
    b1 = jax.random.uniform(k2, (hidden_dim,), dtype, -bound1, bound1)
    w2 = jax.random.uniform(k3, (hidden_dim, input_dim), dtype, -bound2, bound2)
    b2 = jax.random.uniform(k4, (input_dim,), dtype, -bound2, bound2)
    return w1, b1, w2, b2


if __name__ == "__main__":
    key = jax.random.PRNGKey(0)
    kx, kp = jax.random.split(key)

    B, S, C, Hdim = 2, 8, 32, 64          # batch, seq, input_dim, hidden_dim
    x = jax.random.normal(kx, (B, S, C), dtype=jnp.float32)
    w1, b1, w2, b2 = init_params(kp, C, Hdim)

    y = mlp_forward(x, w1, b1, w2, b2)
    y = jax.block_until_ready(y)

    # Reference with matching bf16 matmul casts + tanh GELU (eval dropout = identity).
    x2 = x.reshape(-1, C).astype(jnp.bfloat16)
    h_ref = jnp.dot(x2, w1.astype(jnp.bfloat16),
                    preferred_element_type=jnp.float32) + b1
    h_ref = jax.nn.gelu(h_ref, approximate=True)
    y_ref = (jnp.dot(h_ref.astype(jnp.bfloat16), w2.astype(jnp.bfloat16),
                     preferred_element_type=jnp.float32) + b2).reshape(B, S, C)
    err = float(jnp.max(jnp.abs(y - y_ref.astype(y.dtype))))
    assert err < 2e-2, err

    print("KERNEL_OK")
</pallas_src>

<mosaic_0001>
module attributes {stable_mosaic.version = 11 : i64} {
  func.func @mlp_kernel(%arg0: i32, %arg1: i32, %arg2: memref<8x128xf32, #tpu.memory_space<vmem>>, %arg3: memref<128x128xbf16, #tpu.memory_space<vmem>>, %arg4: memref<1x128xf32, #tpu.memory_space<vmem>>, %arg5: memref<128x128xbf16, #tpu.memory_space<vmem>>, %arg6: memref<1x128xf32, #tpu.memory_space<vmem>>, %arg7: memref<8x128xf32, #tpu.memory_space<vmem>>, %arg8: memref<8x128xf32, #tpu.memory_space<vmem>>) attributes {dimension_semantics = [#tpu.dimension_semantics<parallel>, #tpu.dimension_semantics<arbitrary>], iteration_bounds = array<i64: 2, 1>, scalar_prefetch = 0 : i64, scratch_operands = 1 : i64, tpu.core_type = #tpu.core_type<tc>, window_params = [{transform_indices = @transform_0, window_bounds = array<i64: 8, 128>}, {pipeline_mode = #tpu.pipeline_mode<synchronous>, transform_indices = @transform_1, window_bounds = array<i64: 128, 128>}, {pipeline_mode = #tpu.pipeline_mode<synchronous>, transform_indices = @transform_2, window_bounds = array<i64: 1, 128>}, {pipeline_mode = #tpu.pipeline_mode<synchronous>, transform_indices = @transform_3, window_bounds = array<i64: 128, 128>}, {pipeline_mode = #tpu.pipeline_mode<synchronous>, transform_indices = @transform_4, window_bounds = array<i64: 1, 128>}, {transform_indices = @transform_5, window_bounds = array<i64: 8, 128>}]} {
    %c0_i32 = arith.constant 0 : i32
    %0 = arith.cmpi eq, %arg1, %c0_i32 : i32
    %1 = arith.extui %0 : i1 to i32
    %c0_i32_0 = arith.constant 0 : i32
    %2 = arith.cmpi ne, %1, %c0_i32_0 : i32
    scf.if %2 {
      %cst_19 = arith.constant 0.000000e+00 : f32
      %32 = vector.broadcast %cst_19 : f32 to vector<8x128xf32>
      %c0_20 = arith.constant 0 : index
      %c0_21 = arith.constant 0 : index
      %33 = vector.load %arg8[%c0_20, %c0_21] : memref<8x128xf32, #tpu.memory_space<vmem>>, vector<8x128xf32>
      tpu.vector_store %arg8[%c0_20, %c0_21], %32 {strides = array<i32>} : memref<8x128xf32, #tpu.memory_space<vmem>>, vector<8x128xf32>,
    } else {
    }
    %c0 = arith.constant 0 : index
    %c0_1 = arith.constant 0 : index
    %3 = vector.load %arg2[%c0, %c0_1] : memref<8x128xf32, #tpu.memory_space<vmem>>, vector<8x128xf32>
    %4 = arith.truncf %3 : vector<8x128xf32> to vector<8x128xbf16>
    %c0_2 = arith.constant 0 : index
    %c0_3 = arith.constant 0 : index
    %5 = vector.load %arg3[%c0_2, %c0_3] : memref<128x128xbf16, #tpu.memory_space<vmem>>, vector<128x128xbf16>
    %cst = arith.constant dense<0.000000e+00> : vector<8x128xf32>
    %6 = tpu.matmul %4, %5, %cst {dimension_numbers = #tpu.dot_dimension_numbers<[1], [0], [0], [1], [0, 0, 1, 1], [], []>} : vector<8x128xbf16>, vector<128x128xbf16>, vector<8x128xf32> -> vector<8x128xf32>
    %c0_4 = arith.constant 0 : index
    %c0_5 = arith.constant 0 : index
    %7 = vector.load %arg4[%c0_4, %c0_5] : memref<1x128xf32, #tpu.memory_space<vmem>>, vector<1x128xf32>
    %8 = vector.broadcast %7 : vector<1x128xf32> to vector<8x128xf32>
    %9 = arith.addf %6, %8 : vector<8x128xf32>
    %10 = arith.mulf %9, %9 : vector<8x128xf32>
    %11 = arith.mulf %9, %10 : vector<8x128xf32>
    %cst_6 = arith.constant 4.471500e-02 : f32
    %12 = vector.broadcast %cst_6 : f32 to vector<8x128xf32>
    %13 = arith.mulf %12, %11 : vector<8x128xf32>
    %14 = arith.addf %9, %13 : vector<8x128xf32>
    %cst_7 = arith.constant 0.797884583 : f32
    %15 = vector.broadcast %cst_7 : f32 to vector<8x128xf32>
    %16 = arith.mulf %15, %14 : vector<8x128xf32>
    %17 = math.tanh %16 : vector<8x128xf32>
    %cst_8 = arith.constant 1.000000e+00 : f32
    %18 = vector.broadcast %cst_8 : f32 to vector<8x128xf32>
    %19 = arith.addf %18, %17 : vector<8x128xf32>
    %cst_9 = arith.constant 5.000000e-01 : f32
    %20 = vector.broadcast %cst_9 : f32 to vector<8x128xf32>
    %21 = arith.mulf %20, %19 : vector<8x128xf32>
    %22 = arith.mulf %9, %21 : vector<8x128xf32>
    %c0_10 = arith.constant 0 : index
    %c0_11 = arith.constant 0 : index
    %23 = vector.load %arg8[%c0_10, %c0_11] : memref<8x128xf32, #tpu.memory_space<vmem>>, vector<8x128xf32>
    %24 = arith.truncf %22 : vector<8x128xf32> to vector<8x128xbf16>
    %c0_12 = arith.constant 0 : index
    %c0_13 = arith.constant 0 : index
    %25 = vector.load %arg5[%c0_12, %c0_13] : memref<128x128xbf16, #tpu.memory_space<vmem>>, vector<128x128xbf16>
    %cst_14 = arith.constant dense<0.000000e+00> : vector<8x128xf32>
    %26 = tpu.matmul %24, %25, %cst_14 {dimension_numbers = #tpu.dot_dimension_numbers<[1], [0], [0], [1], [0, 0, 1, 1], [], []>} : vector<8x128xbf16>, vector<128x128xbf16>, vector<8x128xf32> -> vector<8x128xf32>
    %27 = arith.addf %23, %26 : vector<8x128xf32>
    %c0_15 = arith.constant 0 : index
    %c0_16 = arith.constant 0 : index
    %28 = vector.load %arg8[%c0_15, %c0_16] : memref<8x128xf32, #tpu.memory_space<vmem>>, vector<8x128xf32>
    tpu.vector_store %arg8[%c0_15, %c0_16], %27 {strides = array<i32>} : memref<8x128xf32, #tpu.memory_space<vmem>>, vector<8x128xf32>,
    %c0_i32_17 = arith.constant 0 : i32
    %29 = arith.cmpi eq, %arg1, %c0_i32_17 : i32
    %30 = arith.extui %29 : i1 to i32
    %c0_i32_18 = arith.constant 0 : i32
    %31 = arith.cmpi ne, %30, %c0_i32_18 : i32
    scf.if %31 {
      %c0_19 = arith.constant 0 : index
      %c0_20 = arith.constant 0 : index
      %32 = vector.load %arg8[%c0_19, %c0_20] : memref<8x128xf32, #tpu.memory_space<vmem>>, vector<8x128xf32>
      %c0_21 = arith.constant 0 : index
      %c0_22 = arith.constant 0 : index
      %33 = vector.load %arg6[%c0_21, %c0_22] : memref<1x128xf32, #tpu.memory_space<vmem>>, vector<1x128xf32>
      %34 = vector.broadcast %33 : vector<1x128xf32> to vector<8x128xf32>
      %35 = arith.addf %32, %34 : vector<8x128xf32>
      %c0_23 = arith.constant 0 : index
      %c0_24 = arith.constant 0 : index
      %36 = vector.load %arg7[%c0_23, %c0_24] : memref<8x128xf32, #tpu.memory_space<vmem>>, vector<8x128xf32>
      tpu.vector_store %arg7[%c0_23, %c0_24], %35 {strides = array<i32>} : memref<8x128xf32, #tpu.memory_space<vmem>>, vector<8x128xf32>,
    } else {
    }
    return
  }
  func.func @transform_0(%arg0: i32, %arg1: i32) -> (i32, i32) {
    %c0_i32 = arith.constant 0 : i32
    %c0_i32_0 = arith.constant 0 : i32
    return %arg0, %c0_i32 : i32, i32
  }
  func.func @transform_1(%arg0: i32, %arg1: i32) -> (i32, i32) {
    %c0_i32 = arith.constant 0 : i32
    %c0_i32_0 = arith.constant 0 : i32
    return %c0_i32, %arg1 : i32, i32
  }
  func.func @transform_2(%arg0: i32, %arg1: i32) -> (i32, i32) {
    %c0_i32 = arith.constant 0 : i32
    %c0_i32_0 = arith.constant 0 : i32
    return %c0_i32, %arg1 : i32, i32
  }
  func.func @transform_3(%arg0: i32, %arg1: i32) -> (i32, i32) {
    %c0_i32 = arith.constant 0 : i32
    %c0_i32_0 = arith.constant 0 : i32
    return %arg1, %c0_i32 : i32, i32
  }
  func.func @transform_4(%arg0: i32, %arg1: i32) -> (i32, i32) {
    %c0_i32 = arith.constant 0 : i32
    %c0_i32_0 = arith.constant 0 : i32
    %c0_i32_1 = arith.constant 0 : i32
    return %c0_i32, %c0_i32_0 : i32, i32
  }
  func.func @transform_5(%arg0: i32, %arg1: i32) -> (i32, i32) {
    %c0_i32 = arith.constant 0 : i32
    %c0_i32_0 = arith.constant 0 : i32
    return %arg0, %c0_i32 : i32, i32
  }
}

</mosaic_0001>

<bundles_post_ra>
// kernel: tpu_custom_call.1
= control target key start
LH: loop header
LB: loop body
LE: loop exit
PB: predicated region body
PF: predicated region fallthrough
CT: control target
= control target key end

     0   :  { %10 = vsyncpa [#allocation4], 0  ;;  %s1361_s0 = inlined_call_operand.hbm [shape: f32[16,128], index: 0, kind: input, shape index: {}]   ;;  %s1362_s1 = inlined_call_operand.hbm [shape: bf16[128,128], index: 1, kind: input, shape index: {}]   ;;  %s1363_s2 = inlined_call_operand.vmem [shape: f32[1,128], index: 2, kind: input, shape index: {}]   ;;  %s1364_s3 = inlined_call_operand.hbm [shape: bf16[128,128], index: 3, kind: input, shape index: {}]   ;;  %s1365_s4 = inlined_call_operand.vmem [shape: f32[1,128], index: 4, kind: input, shape index: {}]   ;;  %s1366_s5 = inlined_call_operand.hbm [shape: f32[16,128], index: 5, kind: output, shape index: {}]  }
   0x1   :  { %12 = vsyncpa [#allocation4 + $0x1], 0 }
   0x2   :  { %13 = vsyncpa [#allocation7], 0 }
   0x3   :  { %14 = vsyncpa [#allocation5], 0 }
   0x4   :  { %16 = vsyncpa [#allocation5 + $0x1], 0  ;;  %s1098_s18 = smov 0   ;;  %s1100_s19 = smov 0  }
   0x5   :  { %s1102_s20 = smov 0   ;;  %s1104_s21 = smov 0  }
   0x6   :  { %s1106_s22 = smov 0   ;;  %s1108_s23 = smov 0  }
   0x7 LB: > { %s687_s24 = sadd.s32 4294967295, %s1058_s23   ;;  %s688_s25 = sadd.s32 4294967294, %s1058_s23   ;;  %s1058_s23 = sphi %s1108_s23, %s22_s23   ;;  %s1054_s22 = sphi %s1106_s22, %s1388_s22   ;;  %s1050_s21 = sphi %s1104_s21, %s1387_s21   ;;  %s1046_s20 = sphi %s1102_s20, %s1386_s20   ;;  %s1042_s19 = sphi %s1100_s19, %s1385_s19   ;;  %s1038_s18 = sphi %s1098_s18, %s1384_s18  }
   0x8   : > { %p54_p0 = scmp.ne.s32.totalorder %s1042_s19, %s1038_s18  ;;  %p1132_p1 = scmp.eq.s32.totalorder %s687_s24, 0 }
   0x9   : > { %p1136_p2 = scmp.eq.s32.totalorder %s687_s24, 1  ;;  %p183_p3 = scmp.eq.s32.totalorder %s688_s25, 1 }
   0xa   : > { %s1371_s26 = scalar_select %p1132_p1, 1, 0 }
   0xb   : > { %p1142_p4 = por %p1132_p1, %p54_p0  ;;  %p689_p5 = scmp.ge.s32.totalorder %s1058_s23, 1 }
   0xc   : > { %p1147_p6 = por %p183_p3, %p54_p0  ;;  %p190_p7 = scmp.lt.s32.totalorder %s1058_s23, 3 }
   0xd   : > { %s1373_s28 = scalar_select %p1142_p4, 1, 0 }
   0xe   : > { %s1374_s29 = scalar_select %p1147_p6, 1, 0 }
   0xf   : > { %p1152_p8 = pnand %p689_p5, %p190_p7  ;;  %s1060_s6 = smov [#allocation6]  }
  0x10   : > { %s204_s7 = sshll.u32 %s1060_s6, 4  ;;  %s1061_s9 = smov [#allocation8]   ;;  %s1156_s7 = int_to_ptr.vmem [resolvable:$true] %s204_s7 }
  0x11   : > { %p793_p9 = pneg %p1152_p8  ;;  %s226_s10 = sshll.u32 %s1061_s9, 4  ;;  %s1167_s10 = int_to_ptr.vmem [resolvable:$true] %s226_s10 }
  0x12   : > { %s886_s13 = scalar_lea.hbm %s1362_s1, 1024 }
  0x13   : > { %p1163_p11 = pnand %p793_p9, %p1132_p1  ;;  %p887_p12 = scmp.ne.s32.totalorder %s1362_s1, %s886_s13 }
  0x14   : > { %p893_p5 = scmp.lt.u32.totalorder %s886_s13, %s1362_s1 }
  0x15   : > { %p888_p13 = pneg %p1163_p11 }
  0x17   : > { %p889_p0 = pnand %p888_p13, %p887_p12 }
  0x19   : > { %p890_p3 = pneg %p889_p0 }
  0x1b   : > { %p895_p7 = pnand %p893_p5, %p890_p3 }
  0x1d   : > { %898 = shalt.err (!%p895_p7)
}
  0x1e   : > { %s899_s24 = scalar_lea.vmem %s1156_s7, 1024  ;;  %p907_p1 = scmp.lt.s32.totalorder %s1156_s7, %s1156_s7 }
  0x1f   : > { %p900_p9 = scmp.ne.s32.totalorder %s1156_s7, %s899_s24  ;;  %p908_p12 = scmp.lt.s32.totalorder %s899_s24, %s899_s24 }
  0x21   : > { %p902_p10 = pnand %p900_p9, %p888_p13  ;;  %p909_p0 = por %p908_p12, %p907_p1 }
  0x23   : > { %p903_p6 = pneg %p902_p10 }
  0x25   : > { %p910_p4 = pnand %p909_p0, %p903_p6 }
  0x27   : > { %913 = shalt.err (!%p910_p4)
}
  0x28   : > { %s1062_s25 = smov 64   ;;  %s1063_s6 = smov 4  }
  0x29   : > { %796 = dma.hbm_to_vmem [thread:$0]  (!%p1163_p11), %s1362_s1, 1024, %s1156_s7, [#allocation7], %s1062_s25, %s1062_s25, %s1063_s6  }
  0x2a   : > { %s914_s14 = scalar_lea.hbm %s1364_s3, 1024 }
  0x2b   : > { %p915_p1 = scmp.ne.s32.totalorder %s1364_s3, %s914_s14  ;;  %p921_p10 = scmp.lt.u32.totalorder %s914_s14, %s1364_s3 }
  0x2d   : > { %p917_p4 = pnand %p915_p1, %p888_p13 }
  0x2f   : > { %p918_p6 = pneg %p917_p4 }
  0x31   : > { %p923_p3 = pnand %p921_p10, %p918_p6 }
  0x33   : > { %926 = shalt.err (!%p923_p3)
}
  0x34   : > { %s927_s7 = scalar_lea.vmem %s1167_s10, 1024  ;;  %p935_p12 = scmp.lt.s32.totalorder %s1167_s10, %s1167_s10 }
  0x35   : > { %p928_p5 = scmp.ne.s32.totalorder %s1167_s10, %s927_s7  ;;  %p936_p0 = scmp.lt.s32.totalorder %s927_s7, %s927_s7 }
  0x37   : > { %p930_p7 = pnand %p928_p5, %p888_p13  ;;  %p937_p1 = por %p936_p0, %p935_p12 }
  0x39   : > { %p931_p9 = pneg %p930_p7 }
  0x3b   : > { %p938_p4 = pnand %p937_p1, %p931_p9 }
  0x3d   : > { %941 = shalt.err (!%p938_p4)
}
  0x3e   : > { %799 = dma.hbm_to_vmem [thread:$0]  (!%p1163_p11), %s1364_s3, 1024, %s1167_s10, [#allocation7], %s1062_s25, %s1062_s25, %s1063_s6  }
  0x3f   : > { %s34_s12 = sadd.s32 1, %s1054_s22  ;;  %s41_s13 = sadd.s32 1, %s1046_s20 }
  0x40   : > { %p36_p13 = scmp.ge.s32.totalorder %s34_s12, 2  ;;  %p48_p6 = scmp.ne.s32.totalorder %s1046_s20, %s1042_s19 }
  0x41   : > { %p49_p10 = scmp.eq.s32.totalorder %s1058_s23, 0  ;;  %p810_p3 = scmp.lt.s32.totalorder %s1058_s23, 2 }
  0x42   : > { %s1390_s12 = smov (%p36_p13, %s34_s12), 0  ;;  %p1231_p7 = por %p1136_p2, %p48_p6 }
  0x43   : > { %p50_p5 = por %p49_p10, %p48_p6  ;;  %s38_s14 = ssub.s32 %s1054_s22, %s1390_s12 }
  0x44   : > { %s1377_s8 = scalar_select %p1231_p7, 1, 0 }
  0x45   : > { %s243_s15 = sand.u32 1, %s1046_s20   ;;  %p39_p9 = scmp.eq.s32.totalorder %s38_s14, 0 }
  0x46   : > { %s694_s10 = sshll.u32 %s243_s15, 3  ;;  %s695_s25 = sshll.u32 %s1054_s22, 7 }
  0x47   : > { %s1240_s6 = scalar_select %p39_p9, %s1046_s20, %s41_s13  }
  0x48   : > { %s1245_s24 = scalar_lea.hbm %s1361_s0, %s695_s25  ;;  %s247_s27 = scalar_lea.vmem [#allocation3], %s694_s10 }
  0x49   : > { %s254_s7 = sshll.u32 %s247_s27, 4  ;;  %p1249_p2 = pnand %p810_p3, %p50_p5  ;;  %s1253_s7 = int_to_ptr.vmem [resolvable:$true] %s254_s7 }
  0x4a   : > { %s244_s11 = scalar_lea.sflag [#allocation4], %s243_s15  ;;  %s942_s13 = scalar_lea.hbm %s1245_s24, 128 }
  0x4b   : > { %p943_p11 = scmp.ne.s32.totalorder %s1245_s24, %s942_s13  ;;  %p944_p12 = pneg %p1249_p2 }
  0x4c   : > { %s947_s25 = scalar_lea.hbm %s1361_s0, 256  ;;  %p948_p4 = scmp.lt.u32.totalorder %s1245_s24, %s1361_s0 }
  0x4d   : > { %p945_p0 = pnand %p944_p12, %p943_p11  ;;  %p949_p13 = scmp.lt.u32.totalorder %s947_s25, %s942_s13 }
  0x4e   : > { %p951_p10 = scmp.lt.u32.totalorder %s942_s13, %s1245_s24 }
  0x4f   : > { %p946_p1 = pneg %p945_p0  ;;  %p950_p6 = por %p949_p13, %p948_p4 }
  0x51   : > { %p952_p3 = por %p951_p10, %p950_p6 }
  0x53   : > { %p953_p5 = pnand %p952_p3, %p946_p1 }
  0x55   : > { %956 = shalt.err (!%p953_p5)
}
  0x56   : > { %s957_s15 = scalar_lea.vmem %s1253_s7, 128  ;;  %s1064_s27 = smov [#allocation3]  }
  0x57   : > { %p958_p9 = scmp.ne.s32.totalorder %s1253_s7, %s957_s15  ;;  %s962_s14 = sshll.u32 %s1064_s27, 4  ;;  %s963_s14 = int_to_ptr.vmem [resolvable:$false] %s962_s14 }
  0x58   : > { %s964_s10 = scalar_lea.vmem %s963_s14, 256  ;;  %p965_p7 = scmp.lt.s32.totalorder %s1253_s7, %s963_s14 }
  0x59   : > { %p960_p11 = pnand %p958_p9, %p944_p12  ;;  %p966_p4 = scmp.lt.s32.totalorder %s964_s10, %s957_s15 }
  0x5b   : > { %p961_p0 = pneg %p960_p11  ;;  %p967_p13 = por %p966_p4, %p965_p7 }
  0x5d   : > { %p968_p6 = pnand %p967_p13, %p961_p0 }
  0x5f   : > { %971 = shalt.err (!%p968_p6)
}
  0x60   : > { %803 = dma.hbm_to_vmem [thread:$0]  (!%p1249_p2), %s1245_s24, 128, %s1253_s7, %s244_s11  }
  0x61   : > { %263 = sbr.rel (%p1152_p8) target bundleno = 613 (0x265), region = 40  ;;  %s1283_s13 = sand.u32 (!%p1152_p8), 1, %s1042_s19  }
  0x62   : > { %s697_s25 = sshll.u32 (!%p1152_p8), %s1283_s13, 3  ;;  %s266_s16 = scalar_lea.sflag (!%p1152_p8), [#allocation4], %s1283_s13 }
  0x63   : > { %s1289_s17 = scalar_lea.vmem (!%p1152_p8), [#allocation3], %s697_s25  ;;  %p1379_p7 = scmp.ne.s32.totalorder (!%p1152_p8), %s1373_s28, 0 }
  0x68   : > { %1025 = dma.done.wait (%p1379_p7), %s266_s16, 128  }
  0x69   : > { %1027 = vsyncadd (%p1379_p7), %s266_s16, 4294967168  ;;  %p1380_p2 = scmp.ne.s32.totalorder %s1371_s26, 0 }
  0x6b   : > { %1029 = dma.done.wait (%p1380_p2), [#allocation7], 2048  }
  0x6c   : > { %1031 = vsyncadd (%p1380_p2), [#allocation7], 4294965248  ;;  %v1065_v0 = vmov 0.0   ;;  %vm1066_vm0 = vmmov 0   ;;  %v868_v1 = vld [vmem:[#allocation6] sm:$0xff]   ;;  %v869_v2 = vld [vmem:[#allocation6 + $0x8] sm:$0xff]  }
  0x6d   : > { %741 = vmatprep.subr.bf16.mxu0 %v1065_v0  ;;  %757 = vmatprep.mubr.msk.bf16.mxu0 %vm1066_vm0, %v1065_v0  ;;  %v870_v3 = vld [vmem:[#allocation6 + $0x10] sm:$0xff]   ;;  %v871_v4 = vld [vmem:[#allocation6 + $0x18] sm:$0xff]   ;;  %v872_v5 = vld [vmem:[#allocation6 + $0x20] sm:$0xff]   ;;  %s720_s7 = sshll.u32 %s1050_s21, 7  ;;  %s306_s9 = scalar_lea.vmem [#allocation9], %s697_s25 }
  0x6e   : > { %761 = vmatprep.subr.bf16.mxu1 %v1065_v0  ;;  %777 = vmatprep.mubr.msk.bf16.mxu1 %vm1066_vm0, %v1065_v0  ;;  %v873_v6 = vld [vmem:[#allocation6 + $0x28] sm:$0xff]   ;;  %v874_v7 = vld [vmem:[#allocation6 + $0x30] sm:$0xff]   ;;  %v875_v8 = vld [vmem:[#allocation6 + $0x38] sm:$0xff]   ;;  %s574_s11 = sshll.u32 %s306_s9, 4  ;;  %s1312_s14 = scalar_lea.hbm %s1366_s5, %s720_s7  ;;  %s1314_s11 = int_to_ptr.vmem [resolvable:$true] %s574_s11 }
  0x6f   : > { %742 = vmatpush3.bf16.msra.mxu0 %v868_v1  ;;  %v317_v9 = vld [vmem:[%s1289_s17] sm:$0xff]  ;;  %v876_v11 = vld [vmem:[#allocation8] sm:$0xff]   ;;  %v877_v12 = vld [vmem:[#allocation8 + $0x8] sm:$0xff]   ;;  %s561_s21 = scalar_lea.sflag [#allocation5], %s1283_s13  ;;  %s972_s10 = scalar_lea.vmem %s1314_s11, 128 }
  0x70   : > { %743 = vmatprep.subr.bf16.mxu0 %v1065_v0  ;;  %v318_v10 = vpack.c.bf16 %v317_v9, %v317_v9  ;;  %762 = vmatpush3.bf16.msra.mxu1 %v876_v11  ;;  %v878_v13 = vld [vmem:[#allocation8 + $0x10] sm:$0xff]   ;;  %v879_v14 = vld [vmem:[#allocation8 + $0x18] sm:$0xff]   ;;  %v880_v15 = vld [vmem:[#allocation8 + $0x20] sm:$0xff]   ;;  %p973_p8 = scmp.ne.s32.totalorder %s1314_s11, %s972_s10  ;;  %p1381_p12 = scmp.ne.s32.totalorder %s1377_s8, 0 }
  0x71   : > { %763 = vmatprep.subr.bf16.mxu1 %v1065_v0  ;;  %v881_v16 = vld [vmem:[#allocation8 + $0x28] sm:$0xff]   ;;  %v882_v17 = vld [vmem:[#allocation8 + $0x30] sm:$0xff]   ;;  %v883_v18 = vld [vmem:[#allocation8 + $0x38] sm:$0xff]   ;;  %s1067_s25 = smov [#allocation9]  }
  0x72   : > { %v701_v19 = vld [vmem:[%s1363_s2] ss:$0 sm:$0xff]  ;;  %p974_p1 = pnand %p973_p8, %p1381_p12  ;;  %s976_s16 = sshll.u32 %s1067_s25, 4  ;;  %s977_s16 = int_to_ptr.vmem [resolvable:$false] %s976_s16 }
  0x73   : > { %744 = vmatpush3.bf16.msra.mxu0 %v869_v2  ;;  %v718_v35 = vld [vmem:[%s1365_s4] ss:$0 sm:$0xff]  ;;  %s978_s17 = scalar_lea.vmem %s977_s16, 256  ;;  %p979_p3 = scmp.lt.s32.totalorder %s1314_s11, %s977_s16 }
  0x74   : > { %745 = vmatprep.subr.bf16.mxu0 %v1065_v0  ;;  %764 = vmatpush3.bf16.msra.mxu1 %v877_v12  ;;  %p975_p10 = pneg %p974_p1  ;;  %p980_p5 = scmp.lt.s32.totalorder %s978_s17, %s972_s10 }
  0x75   : > { %765 = vmatprep.subr.bf16.mxu1 %v1065_v0 }
  0x76   : > { %p981_p9 = por %p980_p5, %p979_p3 }
  0x77   : > { %746 = vmatpush3.bf16.msra.mxu0 %v870_v3 }
  0x78   : > { %747 = vmatprep.subr.bf16.mxu0 %v1065_v0  ;;  %766 = vmatpush3.bf16.msra.mxu1 %v878_v13  ;;  %p982_p11 = pnand %p981_p9, %p975_p10 }
  0x79   : > { %767 = vmatprep.subr.bf16.mxu1 %v1065_v0 }
  0x7b   : > { %748 = vmatpush3.bf16.msra.mxu0 %v871_v4 }
  0x7c   : > { %749 = vmatprep.subr.bf16.mxu0 %v1065_v0  ;;  %768 = vmatpush3.bf16.msra.mxu1 %v879_v14 }
  0x7d   : > { %769 = vmatprep.subr.bf16.mxu1 %v1065_v0 }
  0x7f   : > { %750 = vmatpush3.bf16.msra.mxu0 %v872_v5 }
  0x80   : > { %751 = vmatprep.subr.bf16.mxu0 %v1065_v0  ;;  %770 = vmatpush3.bf16.msra.mxu1 %v880_v15 }
  0x81   : > { %771 = vmatprep.subr.bf16.mxu1 %v1065_v0 }
  0x83   : > { %752 = vmatpush3.bf16.msra.mxu0 %v873_v6 }
  0x84   : > { %753 = vmatprep.subr.bf16.mxu0 %v1065_v0  ;;  %772 = vmatpush3.bf16.msra.mxu1 %v881_v16 }
  0x85   : > { %773 = vmatprep.subr.bf16.mxu1 %v1065_v0 }
  0x87   : > { %754 = vmatpush3.bf16.msra.mxu0 %v874_v7 }
  0x88   : > { %755 = vmatprep.subr.bf16.mxu0 %v1065_v0  ;;  %774 = vmatpush3.bf16.msra.mxu1 %v882_v17 }
  0x89   : > { %775 = vmatprep.subr.bf16.mxu1 %v1065_v0 }
  0x8b   : > { %756 = vmatpush3.bf16.msra.mxu0 %v875_v8 }
  0x8c   : > { %776 = vmatpush3.bf16.msra.mxu1 %v883_v18 }
  0x8e   : > { %758 = vmatmul.mubr.bf16.vlgmr.msra.gmra.mrb[0].mxu0 %v318_v10 }
 0x161   : > { %v424_v20 = vpop.f32.mrb[0].mxu0 }
 0x162   : > { %v425_v21 = vadd.f32 %v701_v19, %v424_v20  ;;  %v759_v22 = vpop.f32.mrb[1].mxu0 }
 0x163   : > { %v427_v23 = vpop.f32.mrb[2].mxu0 }
 0x164   : > { %v430_v24 = vmul.f32 %v425_v21, %v425_v21  ;;  %v760_v25 = vpop.f32.mrb[3].mxu0 }
 0x166   : > { %v431_v26 = vmul.f32 %v430_v24, %v425_v21 }
 0x168   : > { %v432_v27 = vmul.f32 0.044715, %v431_v26 }
 0x16a   : > { %v433_v28 = vadd.f32 %v432_v27, %v425_v21 }
 0x16c   : > { %v434_v29 = vmul.f32 0.7978846, %v433_v28 }
 0x16e   : > { %884 = vtanh.f32 %v434_v29 }
 0x178   : > { %v885_v30 = vpop.eup %884 }
 0x179   : > { %v436_v31 = vadd.f32 1.0, %v885_v30 }
 0x17b   : > { %v437_v32 = vmul.f32 0.5, %v436_v31 }
 0x17d   : > { %v438_v33 = vmul.f32 %v437_v32, %v425_v21 }
 0x17f   : > { %v440_v34 = vpack.c.bf16 %v438_v33, %v438_v33 }
 0x181   : > { %778 = vmatmul.mubr.bf16.vlgmr.msra.gmra.mrb[0].mxu1 %v440_v34 }
 0x254   : > { %v539_v36 = vpop.f32.mrb[0].mxu1 }
 0x255   : > { %v558_v37 = vadd.f32 %v718_v35, %v539_v36  ;;  %v779_v38 = vpop.f32.mrb[1].mxu1 }
 0x256   : > { %v542_v39 = vpop.f32.mrb[2].mxu1 }
 0x257   : > { %559 = vst [vmem:[%s306_s9] sm:$0xff] %v558_v37  ;;  %v780_v40 = vpop.f32.mrb[3].mxu1 }
 0x258   : > { %985 = shalt.err (!%p982_p11)
}
 0x259   : > { %s986_s13 = scalar_lea.hbm %s1312_s14, 128  ;;  %s990_s30 = scalar_lea.hbm %s1366_s5, 256 }
 0x25a   : > { %p987_p0 = scmp.ne.s32.totalorder %s1312_s14, %s986_s13  ;;  %p991_p6 = scmp.lt.u32.totalorder %s1312_s14, %s1366_s5 }
 0x25b   : > { %p992_p7 = scmp.lt.u32.totalorder %s990_s30, %s986_s13  ;;  %p994_p8 = scmp.lt.u32.totalorder %s986_s13, %s1312_s14 }
 0x25c   : > { %p988_p4 = pnand %p987_p0, %p1381_p12 }
 0x25d   : > { %p993_p2 = por %p992_p7, %p991_p6 }
 0x25e   : > { %p989_p13 = pneg %p988_p4 }
 0x25f   : > { %p995_p1 = por %p994_p8, %p993_p2 }
 0x261   : > { %p996_p10 = pnand %p995_p1, %p989_p13 }
 0x263   : > { %999 = shalt.err (!%p996_p10)
}
 0x264   : > { %791 = dma.vmem_to_hbm [thread:$0]  (%p1381_p12), %s1314_s11, 128, %s1312_s14, %s561_s21  }
 0x265 PF: > { %s586_s9 = sand.u32 1, %s1038_s18   ;;  %p1382_p3 = scmp.ne.s32.totalorder %s1374_s29, 0 }
 0x266   : > { %p1383_p5 = scmp.ge.s32.totalorder %s1058_s23, 2  ;;  %s587_s15 = scalar_lea.sflag [#allocation5], %s586_s9 }
 0x268   : > { %p805_p9 = pnand %p1383_p5, %p1382_p3 }
 0x26a   : > { %1033 = dma.done.wait (!%p805_p9), %s587_s15, 128  }
 0x26b   : > { %1035 = vsyncadd (!%p805_p9), %s587_s15, 4294967168  ;;  %s22_s23 = sadd.s32 1, %s1058_s23   ;;  %s1384_s18 = smov %s1042_s19 }
 0x26c   : > { %p19_p11 = scmp.ge.s32.totalorder %s22_s23, 4   ;;  %s1385_s19 = smov %s1046_s20 }
 0x26d   : > { %s1386_s20 = smov %s1240_s6  ;;  %s1387_s21 = smov %s1054_s22 }
 0x26e   : > { %s1388_s22 = smov %s1390_s12  ;;  %21 = sbr.rel (!%p19_p11) target bundleno = 7 (0x7), region = 106 }
 0x275   :  { %592 = vsyncpa [#allocation4], 1 }
 0x276   :  { %594 = vsyncpa [#allocation4 + $0x1], 1 }
 0x277   :  { %595 = vsyncpa [#allocation7], 1 }
 0x278   :  { %596 = vsyncpa [#allocation5], 1 }
 0x279   :  { %598 = vsyncpa [#allocation5 + $0x1], 1 }

</bundles_post_ra>
